<compile_context>
chip_gen: v5e
topology: v5e:2x2
jax: 0.10.0
libtpu: 0.0.40
codegen_flags: <defaults>
</compile_context>

<pallas_src>
import math

import jax
import jax.numpy as jnp
from jax.experimental import pallas as pl
from jax.experimental.pallas import tpu as pltpu


_LANE_CANDIDATES = (512, 1024, 256, 128)   # preferred lane-dense slab widths
_DEFAULT_BLOCK_BYTES = 8 << 20             # ~8 MiB per-step block budget
_DEFAULT_MIN_PALLAS_BYTES = 1 << 20        # below this, plain fused XLA wins


def _round_down(x, m):
    return (x // m) * m


def _num_tensorcores_per_device():
    """Best-effort TensorCores per device: 2 on megacore parts, else 1."""
    try:
        dev = jax.devices()[0]
        n = getattr(dev, "num_cores", None)
        if isinstance(n, int) and n >= 1:
            return n
        kind = str(getattr(dev, "device_kind", "")).lower()
        if any(tag in kind for tag in ("v4", "v5p", "v7", "7x")):
            return 2
    except Exception:
        pass
    return 1


class LambdaLayer:
    """JAX/Pallas port of the PyTorch LambdaLayer: forward(x) = func(x).

    The tiled Pallas path assumes `func` is elementwise (does not mix data
    across elements) and shape-preserving.  Shape-changing funcs, tiny
    tensors, and `elementwise=False` fall back to plain JAX.
    """

    def __init__(self, func, *, elementwise=True,
                 target_block_bytes=_DEFAULT_BLOCK_BYTES,
                 min_pallas_bytes=_DEFAULT_MIN_PALLAS_BYTES):
        self.func = func
        # NOTE: axis-dependent but shape-preserving funcs (softmax, cumsum,
        # roll, layer-norm, ...) would pass the shape check yet give wrong
        # results after flatten+tiling; pass elementwise=False for those.
        self.elementwise = elementwise
        self.target_block_bytes = int(target_block_bytes)
        self.min_pallas_bytes = int(min_pallas_bytes)
        self._min_grid_steps = 4 if _num_tensorcores_per_device() >= 2 else 1
        self._forward = jax.jit(self._forward_impl)

    def __call__(self, x):
        return self._forward(x)

    # ------------------------- Pallas pieces -------------------------

    def _make_kernel(self, upcast):
        func = self.func

        def kernel(x_ref, o_ref):
            v = x_ref[...]
            if upcast:
                # One explicit up-cast per tile; v5e VPU/EUP have no bf16 path.
                v = v.astype(jnp.float32)
            o_ref[...] = func(v).astype(o_ref.dtype)

        return kernel

    def _pallas_2d(self, x2d, out_dtype, upcast):
        """Apply func elementwise to a (M, L) lane-dense slab via Pallas."""
        M, L = x2d.shape
        in_bytes = jnp.dtype(x2d.dtype).itemsize
        out_bytes = jnp.dtype(out_dtype).itemsize
        budget_bytes = max(in_bytes, out_bytes, 4 if upcast else 1)

        # Dtype-aware sublane packing: 8 rows (f32), 16 (bf16), 32 (int8/fp8).
        sub = max(8, 32 // max(1, min(in_bytes, out_bytes)))

        max_rows = max(sub, _round_down(self.target_block_bytes // (L * budget_bytes), sub))
        min_steps = self._min_grid_steps
        if M <= sub or (min_steps <= 1 and M <= max_rows):
            row_tile = M                       # single block == full array dims
        else:
            row_tile = min(max_rows, max(sub, _round_down(M, sub)))
            if min_steps > 1:
                # Megacore parts: keep >=2 blocks per TensorCore so the
                # BlockSpec double-buffer pipeline has work to overlap.
                per_step = max(sub, _round_down(pl.cdiv(M, min_steps), sub))
                row_tile = min(row_tile, per_step)

        grid = (pl.cdiv(M, row_tile),)

        # VMEM budget: double-buffered in+out blocks (+f32 compute temp) + slack,
        # capped well under v7x's 64 MiB physical VMEM.
        in_blk = row_tile * L * in_bytes
        out_blk = row_tile * L * out_bytes
        tmp_blk = row_tile * L * 4 if upcast else 0
        vmem_limit = int(min(56 << 20,
                             max(32 << 20, 2 * (in_blk + out_blk + tmp_blk) + (8 << 20))))

        # Donate the input slab when the op is dtype-preserving (safe: in/out
        # use identical elementwise block index maps).
        alias = {0: 0} if jnp.dtype(out_dtype) == jnp.dtype(x2d.dtype) else {}

        return pl.pallas_call(
            self._make_kernel(upcast),
            out_shape=jax.ShapeDtypeStruct((M, L), out_dtype),
            grid=grid,
            in_specs=[pl.BlockSpec((row_tile, L), lambda i: (i, 0))],
            out_specs=pl.BlockSpec((row_tile, L), lambda i: (i, 0)),
            compiler_params=pltpu.CompilerParams(
                dimension_semantics=("parallel",),
                vmem_limit_bytes=vmem_limit,
            ),
            input_output_aliases=alias,
        )(x2d)

    # ---- Forward (jitted; all branch decisions are static shape/dtype) ----

    def _forward_impl(self, x):
        orig_shape = x.shape
        total = int(math.prod(orig_shape)) if orig_shape else 1

        if not self.elementwise or x.size == 0:
            return self.func(x)

        # Small-tensor fast path: fused XLA elementwise is already at roofline
        # and avoids the fixed pallas_call/reshape dispatch overhead.
        if total * jnp.dtype(x.dtype).itemsize < self.min_pallas_bytes:
            return self.func(x)

        # Trace-only query of func's output shape/dtype (no FLOPs executed).
        out_aval = jax.eval_shape(self.func, jax.ShapeDtypeStruct(x.shape, x.dtype))
        if not isinstance(out_aval, jax.ShapeDtypeStruct) or out_aval.shape != x.shape:
            # TODO(synk): shape-changing funcs (pad/slice lambdas) have no
            # generic tiled Pallas form; fall back to plain JAX for correctness.
            return self.func(x)
        out_dtype = out_aval.dtype

        upcast = (jnp.issubdtype(x.dtype, jnp.floating)
                  and jnp.dtype(x.dtype).itemsize == 2)

        # Lane-dense width that exactly divides the element count -> the
        # flatten is a zero-copy reshape (no pad, no output slice).
        lanes = next((l for l in _LANE_CANDIDATES if total % l == 0), None)
        flat = x.reshape(-1)

        if lanes is not None:
            out2d = self._pallas_2d(flat.reshape(total // lanes, lanes), out_dtype, upcast)
            return out2d.reshape(orig_shape)

        # Ragged total (not a multiple of 128): Pallas on the aligned head,
        # plain JAX on the (<128-element) tail.  No full-tensor pad/slice.
        main = _round_down(total, 128)
        if main == 0:
            return self.func(x)
        head2d = self._pallas_2d(flat[:main].reshape(main // 128, 128), out_dtype, upcast)
        tail = self.func(flat[main:]).astype(out_dtype)
        return jnp.concatenate([head2d.reshape(-1), tail]).reshape(orig_shape)


if __name__ == "__main__":
    key = jax.random.PRNGKey(0)
    # NCHW activation like the PyTorch module would see.
    x = jax.random.normal(key, (2, 4, 16, 16), dtype=jnp.float32)

    # Representative lambda (the kind of func LambdaLayer wraps in ICCT):
    # scaled-tanh GELU, purely elementwise.
    func = lambda t: 0.5 * t * (1.0 + jnp.tanh(0.7978845608 * (t + 0.044715 * t * t * t)))

    # min_pallas_bytes=0 forces the Pallas path even for this small demo tensor.
    layer = LambdaLayer(func, min_pallas_bytes=0)
    y = jax.block_until_ready(layer(x))
    ref = func(x)
    assert y.shape == x.shape and y.dtype == ref.dtype
    assert jnp.allclose(y, ref, atol=1e-5, rtol=1e-5)

    # Ragged element count (not a multiple of 128): Pallas head + JAX tail,
    # no full-tensor pad/slice round-trip.
    x2 = jax.random.normal(jax.random.PRNGKey(1), (3, 50, 7), dtype=jnp.float32)
    y2 = jax.block_until_ready(layer(x2))
    assert y2.shape == x2.shape
    assert jnp.allclose(y2, func(x2), atol=1e-5, rtol=1e-5)

    # Multi-step tiled path (bf16): exercises the pipelined grid and the
    # in-kernel f32 up-cast.  Small block budget forces several grid steps.
    x3 = jax.random.normal(jax.random.PRNGKey(2), (8, 64, 64, 64), dtype=jnp.bfloat16)
    layer2 = LambdaLayer(func, target_block_bytes=1 << 20)
    y3 = jax.block_until_ready(layer2(x3))
    ref3 = func(x3.astype(jnp.float32)).astype(jnp.bfloat16)
    assert y3.shape == x3.shape and y3.dtype == jnp.bfloat16
    assert jnp.allclose(y3.astype(jnp.float32), ref3.astype(jnp.float32),
                        atol=2e-2, rtol=2e-2)

    print("KERNEL_OK")
</pallas_src>

<mosaic_0001>
module attributes {stable_mosaic.version = 11 : i64} {
  func.func @kernel(%arg0: i32, %arg1: memref<4x512xf32, #tpu.memory_space<vmem>>, %arg2: memref<4x512xf32, #tpu.memory_space<vmem>>) attributes {dimension_semantics = [#tpu.dimension_semantics<parallel>], iteration_bounds = array<i64: 1>, scalar_prefetch = 0 : i64, scratch_operands = 0 : i64, tpu.core_type = #tpu.core_type<tc>, window_params = [{transform_indices = @transform_0, window_bounds = array<i64: 4, 512>}, {transform_indices = @transform_1, window_bounds = array<i64: 4, 512>}]} {
    %c0 = arith.constant 0 : index
    %c0_0 = arith.constant 0 : index
    %0 = vector.load %arg1[%c0, %c0_0] : memref<4x512xf32, #tpu.memory_space<vmem>>, vector<4x512xf32>
    %cst = arith.constant 5.000000e-01 : f32
    %1 = vector.broadcast %cst : f32 to vector<4x512xf32>
    %2 = arith.mulf %1, %0 : vector<4x512xf32>
    %cst_1 = arith.constant 4.471500e-02 : f32
    %3 = vector.broadcast %cst_1 : f32 to vector<4x512xf32>
    %4 = arith.mulf %3, %0 : vector<4x512xf32>
    %5 = arith.mulf %4, %0 : vector<4x512xf32>
    %6 = arith.mulf %5, %0 : vector<4x512xf32>
    %7 = arith.addf %0, %6 : vector<4x512xf32>
    %cst_2 = arith.constant 0.797884583 : f32
    %8 = vector.broadcast %cst_2 : f32 to vector<4x512xf32>
    %9 = arith.mulf %8, %7 : vector<4x512xf32>
    %10 = math.tanh %9 : vector<4x512xf32>
    %cst_3 = arith.constant 1.000000e+00 : f32
    %11 = vector.broadcast %cst_3 : f32 to vector<4x512xf32>
    %12 = arith.addf %11, %10 : vector<4x512xf32>
    %13 = arith.mulf %2, %12 : vector<4x512xf32>
    %c0_4 = arith.constant 0 : index
    %c0_5 = arith.constant 0 : index
    %14 = vector.load %arg2[%c0_4, %c0_5] : memref<4x512xf32, #tpu.memory_space<vmem>>, vector<4x512xf32>
    tpu.vector_store %arg2[%c0_4, %c0_5], %13 {strides = array<i32>} : memref<4x512xf32, #tpu.memory_space<vmem>>, vector<4x512xf32>,
    return
  }
  func.func @transform_0(%arg0: i32) -> (i32, i32) {
    %c0_i32 = arith.constant 0 : i32
    %c0_i32_0 = arith.constant 0 : i32
    return %arg0, %c0_i32 : i32, i32
  }
  func.func @transform_1(%arg0: i32) -> (i32, i32) {
    %c0_i32 = arith.constant 0 : i32
    %c0_i32_0 = arith.constant 0 : i32
    return %arg0, %c0_i32 : i32, i32
  }
}

</mosaic_0001>

<bundles_post_ra>
// kernel: _forward_impl.1
= control target key start
LH: loop header
LB: loop body
LE: loop exit
PB: predicated region body
PF: predicated region fallthrough
CT: control target
= control target key end

     0   :  { %s60_s0 = inlined_call_operand.vmem [shape: f32[4,512], index: 0, kind: input, shape index: {}, may-alias: {0,1}]   ;;  %s61_s1 = inlined_call_operand.vmem [shape: f32[4,512], index: 1, kind: output, shape index: {}, may-alias: {0,1}]  }
   0x1   :  { %v8_v0 = vld [vmem:[%s60_s0] sm:$0xff]  ;;  %v9_v1 = vld [vmem:[%s60_s0 + $0x8] sm:$0xff] }
   0x2   :  { %v12_v2 = vmul.f32 0.044715, %v8_v0  ;;  %v13_v3 = vmul.f32 0.044715, %v9_v1  ;;  %v10_v12 = vmul.f32 0.5, %v8_v0  ;;  %v11_v14 = vmul.f32 0.5, %v9_v1 }
   0x4   :  { %v14_v4 = vmul.f32 %v12_v2, %v8_v0  ;;  %v15_v5 = vmul.f32 %v13_v3, %v9_v1 }
   0x6   :  { %v16_v6 = vmul.f32 %v14_v4, %v8_v0  ;;  %v17_v7 = vmul.f32 %v15_v5, %v9_v1 }
   0x8   :  { %v18_v8 = vadd.f32 %v16_v6, %v8_v0  ;;  %v19_v9 = vadd.f32 %v17_v7, %v9_v1 }
   0xa   :  { %v20_v10 = vmul.f32 0.7978846, %v18_v8  ;;  %v21_v11 = vmul.f32 0.7978846, %v19_v9 }
   0xc   :  { %34 = vtanh.f32 %v20_v10 }
   0xd   :  { %36 = vtanh.f32 %v21_v11 }
  0x12   :  { %v35_v13 = vpop.eup %34 }
  0x13   :  { %v37_v15 = vpop.eup %36  ;;  %v24_v16 = vadd.f32 1.0, %v35_v13 }
  0x14   :  { %v25_v17 = vadd.f32 1.0, %v37_v15 }
  0x15   :  { %v26_v18 = vmul.f32 %v24_v16, %v10_v12 }
  0x16   :  { %v27_v19 = vmul.f32 %v25_v17, %v11_v14 }
  0x17   :  { %28 = vst [vmem:[%s61_s1] sm:$0xff] %v26_v18 }
  0x18   :  { %29 = vst [vmem:[%s61_s1 + $0x8] sm:$0xff] %v27_v19 }

</bundles_post_ra>
